<compile_context>
chip_gen: v7x
topology: tpu7x:2x2x1
jax: 0.10.0
libtpu: 0.0.40
codegen_flags: <defaults>
</compile_context>

<pallas_src>
import functools

import jax
import jax.numpy as jnp
from jax import lax
from jax.experimental import pallas as pl
from jax.experimental.pallas import tpu as pltpu

_EPS = 1e-8

# Deterministic, non-learnable module parameters (used by the pure-JAX
# reference check; the Pallas kernel bakes them in as finite differences).
_KERNEL_H = jnp.array([[0.0, 0.0, 0.0],
                       [-1.0, 0.0, 1.0],
                       [0.0, 0.0, 0.0]], jnp.float32)
_KERNEL_V = jnp.array([[0.0, -1.0, 0.0],
                       [0.0, 0.0, 0.0],
                       [0.0, 1.0, 0.0]], jnp.float32)


def _ceil_to(x, m):
    return -(-x // m) * m


def _vmem_capacity_bytes():
    """Generation-aware VMEM capacity (v5e/v6e: 128 MiB, v7x: 64 MiB per TC)."""
    try:
        return int(pltpu.get_tpu_info().vmem_capacity_bytes)
    except Exception:
        return 64 * 1024 * 1024  # conservative fallback: assume v7x-sized VMEM


def _choose_blocking(N, fits):
    """Pick (B images, c_block channels) per grid step.

    Prefers group-fused 9-channel blocks (fewer, larger DMAs); falls back to
    per-group 3-channel blocks when VMEM is tight or when more grid steps are
    needed for pipeline overlap / v7x's two TensorCores.  `fits` must be
    monotone in both arguments (it is: it's a byte count vs. a budget).
    """
    divisors = [d for d in range(N, 0, -1) if N % d == 0]
    want_steps = min(4, N * 3)  # >= 2 for double-buffer overlap, prefer 4
    for c_block in (9, 3):
        g_steps = 9 // c_block
        for B in divisors:
            if (N // B) * g_steps < want_steps:
                continue
            if fits(B, c_block):
                return B, c_block, True
    return 1, 3, False  # even the smallest block overflows the budget


def _grad_loss_kernel(infer_ref, gt_ref, out_ref, *, do_transpose):
    """One grid step: a (B, c_block, H, W) slab of both inputs (native dtype).

    For every (image, group) in the slab, builds the finite-difference
    gradient magnitude of the per-group channel sum for `infer` and `gt` and
    accumulates |grad_infer - grad_gt| into one (Hc, Wc) f32 accumulator;
    the accumulator is reduced over sublanes and stored as a lane-dense
    (1, 1, 1, Wc) partial sum.
    """
    B, c_block, H, W = infer_ref.shape
    n_groups = c_block // 3
    Hc, Wc = (W, H) if do_transpose else (H, W)
    eps = jnp.float32(_EPS)

    # Border-validity masks: built ONCE per grid step in compute space and
    # shared by every (image, group, input) gradient map -- applied as
    # multiplies to zero the wrapped-around roll contributions.
    row = lax.broadcasted_iota(jnp.int32, (Hc, Wc), 0)
    col = lax.broadcasted_iota(jnp.int32, (Hc, Wc), 1)
    m_cp = (col < Wc - 1).astype(jnp.float32)   # neighbour at col+1 exists
    m_cm = (col > 0).astype(jnp.float32)        # neighbour at col-1 exists
    m_rp = (row < Hc - 1).astype(jnp.float32)   # neighbour at row+1 exists
    m_rm = (row > 0).astype(jnp.float32)        # neighbour at row-1 exists

    def grad_map(x3):
        # Grouped conv with identical fixed per-channel kernels == finite
        # difference of the per-group channel sum.  Cast to f32 happens HERE
        # (inputs stream from HBM in their native dtype).
        s = jnp.sum(x3.astype(jnp.float32), axis=0)           # (H, W) f32
        if do_transpose:
            s = s.T                                            # lane-dense (W, H)
        # jnp.roll lowers to XLU lane/sublane rotates (free slot vs. the VPU).
        d_c = jnp.roll(s, -1, axis=1) * m_cp - jnp.roll(s, 1, axis=1) * m_cm
        d_r = jnp.roll(s, -1, axis=0) * m_rp - jnp.roll(s, 1, axis=0) * m_rm
        return jnp.sqrt(d_c * d_c + d_r * d_r + eps)

    def per_image(b, acc):
        for g in range(n_groups):                  # static: 1 or 3 groups/block
            xi = infer_ref[b, pl.ds(3 * g, 3), :, :]   # (3, H, W) native dtype
            xg = gt_ref[b, pl.ds(3 * g, 3), :, :]
            acc = acc + jnp.abs(grad_map(xi) - grad_map(xg))
        return acc

    acc = lax.fori_loop(0, B, per_image, jnp.zeros((Hc, Wc), jnp.float32))
    # One cheap sublane reduce per step -> tiny lane-dense partial store.
    out_ref[...] = jnp.sum(acc, axis=0, keepdims=True)[None, None]


def cal_grad_loss(infer, gt):
    """Pallas equivalent of cal_grad_loss().forward(infer, gt)."""
    assert infer.shape == gt.shape
    N, C, H, W = infer.shape
    assert C == 9, "module's grouped conv (weight [3,3,3,3], groups=3) needs C=9"

    # Lane density for tall/narrow images: the gradient magnitude and the L1
    # mean are invariant under an H/W swap (x_h and x_v exchange roles), so
    # the kernel computes on the transposed VMEM tile; no HBM transpose.
    do_transpose = (W < 128) and (H >= 128)
    Hc, Wc = (W, H) if do_transpose else (H, W)

    itemsize = infer.dtype.itemsize
    hp_in, wp_in = _ceil_to(H, 8), _ceil_to(W, 128)   # padded VMEM tile dims
    hp_c, wp_c = _ceil_to(Hc, 8), _ceil_to(Wc, 128)

    vmem_cap = _vmem_capacity_bytes()
    vmem_limit = min((vmem_cap * 3) // 4, 100 * 1024 * 1024)  # ~96 MiB v5e/v6e, ~48 MiB v7x
    budget = (vmem_limit * 7) // 10                           # headroom for Mosaic scratch

    tmp_bytes = 16 * hp_c * wp_c * 4  # f32 in-body temporaries (acc/masks/rolls/grads)

    def fits(B, c_block):
        # 2 inputs x 2 pipeline buffers x block bytes (padded tiles), plus
        # in-body temporaries and ~1 MiB slack for the (tiny) output buffers.
        in_bytes = 2 * 2 * B * c_block * hp_in * wp_in * itemsize
        return in_bytes + tmp_bytes + (1 << 20) <= budget

    B, c_block, fitted = _choose_blocking(N, fits)
    if not fitted:
        # Very large frames: even a (1, 3, H, W) block overflows the budget.
        # Run anyway with a near-physical limit.
        # TODO(synk): H-strip tiling with a 1-row halo for 720p+ frames.
        vmem_limit = (vmem_cap * 9) // 10

    nb = N // B
    g_steps = 9 // c_block
    denom = float(N * 3 * H * W)  # L1Loss(reduction='mean') over (N, 3, H, W)

    cost = pl.CostEstimate(
        flops=int(2 * N * 3 * H * W * 24),
        transcendentals=int(2 * N * 3 * H * W),            # the sqrt's
        bytes_accessed=int(2 * N * 9 * H * W * itemsize + nb * g_steps * Wc * 4),
    )

    kernel = functools.partial(_grad_loss_kernel, do_transpose=do_transpose)

    partial_sums = pl.pallas_call(
        kernel,
        out_shape=jax.ShapeDtypeStruct((nb, g_steps, 1, Wc), jnp.float32),
        grid_spec=pltpu.PrefetchScalarGridSpec(
            num_scalar_prefetch=0,
            grid=(nb, g_steps),
            in_specs=[
                pl.BlockSpec((B, c_block, H, W), lambda n, g: (n, g, 0, 0)),
                pl.BlockSpec((B, c_block, H, W), lambda n, g: (n, g, 0, 0)),
            ],
            out_specs=pl.BlockSpec((1, 1, 1, Wc), lambda n, g: (n, g, 0, 0)),
        ),
        compiler_params=pltpu.CompilerParams(
            # No cross-step state -> both axes can be split across v7x's two
            # TensorCores; harmless (no-op) on single-TC v5e/v6e.
            dimension_semantics=("parallel", "parallel"),
            vmem_limit_bytes=int(vmem_limit),
        ),
        cost_estimate=cost,
    )(infer, gt)

    # Single final (tiny) reduction done by XLA in the wrapper.
    return jnp.sum(partial_sums) / jnp.float32(denom)


def _reference_loss(infer, gt):
    """Pure-JAX reference mirroring the PyTorch module (grouped conv2d)."""
    wh = jnp.tile(_KERNEL_H[None, None], (3, 3, 1, 1))  # OIHW [3,3,3,3]
    wv = jnp.tile(_KERNEL_V[None, None], (3, 3, 1, 1))

    def grad_map(x):
        conv = functools.partial(
            lax.conv_general_dilated,
            window_strides=(1, 1),
            padding=((1, 1), (1, 1)),
            dimension_numbers=("NCHW", "OIHW", "NCHW"),
            feature_group_count=3,
            precision=lax.Precision.HIGHEST,
        )
        x_h = conv(x, wh)
        x_v = conv(x, wv)
        return jnp.sqrt(x_h * x_h + x_v * x_v + _EPS)

    return jnp.mean(jnp.abs(grad_map(infer) - grad_map(gt)))


if __name__ == "__main__":
    key = jax.random.PRNGKey(0)
    k1, k2, k3, k4 = jax.random.split(key, 4)

    # 1) Small module-consistent shape (C must be 9 for the groups=3 conv).
    infer = jax.random.uniform(k1, (2, 9, 16, 16), dtype=jnp.float32)
    gt = jax.random.uniform(k2, (2, 9, 16, 16), dtype=jnp.float32)
    loss = jax.block_until_ready(cal_grad_loss(infer, gt))
    ref = jax.block_until_ready(_reference_loss(infer, gt))
    assert jnp.allclose(loss, ref, atol=1e-5, rtol=1e-5), (loss, ref)

    # 2) bf16 inputs: the f32 cast happens inside the kernel (no wrapper copy).
    infer_bf = infer.astype(jnp.bfloat16)
    gt_bf = gt.astype(jnp.bfloat16)
    loss_bf = jax.block_until_ready(cal_grad_loss(infer_bf, gt_bf))
    ref_bf = jax.block_until_ready(
        _reference_loss(infer_bf.astype(jnp.float32), gt_bf.astype(jnp.float32)))
    assert jnp.allclose(loss_bf, ref_bf, atol=1e-5, rtol=1e-4), (loss_bf, ref_bf)

    # 3) Tall image (W < 128 <= H): exercises the in-kernel transpose path that
    #    replaced the old wrapper-side HBM transpose.
    infer_t = jax.random.uniform(k3, (1, 9, 256, 64), dtype=jnp.float32)
    gt_t = jax.random.uniform(k4, (1, 9, 256, 64), dtype=jnp.float32)
    loss_t = jax.block_until_ready(cal_grad_loss(infer_t, gt_t))
    ref_t = jax.block_until_ready(_reference_loss(infer_t, gt_t))
    assert jnp.allclose(loss_t, ref_t, atol=1e-5, rtol=1e-5), (loss_t, ref_t)

    # 4) Larger batch: exercises the group-fused (9-channel) blocks with B>1
    #    images per grid step (fori_loop over images with dynamic indexing).
    infer_b = jax.random.uniform(k3, (8, 9, 16, 16), dtype=jnp.float32)
    gt_b = jax.random.uniform(k4, (8, 9, 16, 16), dtype=jnp.float32)
    loss_b = jax.block_until_ready(cal_grad_loss(infer_b, gt_b))
    ref_b = jax.block_until_ready(_reference_loss(infer_b, gt_b))
    assert jnp.allclose(loss_b, ref_b, atol=1e-5, rtol=1e-5), (loss_b, ref_b)

    print("KERNEL_OK")
</pallas_src>

<mosaic_0001>
module attributes {stable_mosaic.version = 11 : i64} {
  func.func @_grad_loss_kernel(%arg0: i32, %arg1: i32, %arg2: memref<1x3x16x16xf32, #tpu.memory_space<vmem>>, %arg3: memref<1x3x16x16xf32, #tpu.memory_space<vmem>>, %arg4: memref<1x1x1x16xf32, #tpu.memory_space<vmem>>) attributes {dimension_semantics = [#tpu.dimension_semantics<parallel>, #tpu.dimension_semantics<parallel>], iteration_bounds = array<i64: 2, 3>, scalar_prefetch = 0 : i64, scratch_operands = 0 : i64, tpu.core_type = #tpu.core_type<tc>, window_params = [{transform_indices = @transform_0, window_bounds = array<i64: 1, 3, 16, 16>}, {transform_indices = @transform_1, window_bounds = array<i64: 1, 3, 16, 16>}, {transform_indices = @transform_2, window_bounds = array<i64: 1, 1, 1, 16>}]} {
    %0 = tpu.iota {dimensions = array<i32: 0>} : vector<16x16xi32>
    %1 = tpu.iota {dimensions = array<i32: 1>} : vector<16x16xi32>
    %c15_i32 = arith.constant 15 : i32
    %2 = vector.broadcast %c15_i32 : i32 to vector<16x16xi32>
    %3 = arith.cmpi slt, %1, %2 : vector<16x16xi32>
    %4 = arith.extui %3 : vector<16x16xi1> to vector<16x16xi32>
    %5 = arith.sitofp %4 : vector<16x16xi32> to vector<16x16xf32>
    %c0_i32 = arith.constant 0 : i32
    %6 = vector.broadcast %c0_i32 : i32 to vector<16x16xi32>
    %7 = arith.cmpi sgt, %1, %6 : vector<16x16xi32>
    %8 = arith.extui %7 : vector<16x16xi1> to vector<16x16xi32>
    %9 = arith.sitofp %8 : vector<16x16xi32> to vector<16x16xf32>
    %c15_i32_0 = arith.constant 15 : i32
    %10 = vector.broadcast %c15_i32_0 : i32 to vector<16x16xi32>
    %11 = arith.cmpi slt, %0, %10 : vector<16x16xi32>
    %12 = arith.extui %11 : vector<16x16xi1> to vector<16x16xi32>
    %13 = arith.sitofp %12 : vector<16x16xi32> to vector<16x16xf32>
    %c0_i32_1 = arith.constant 0 : i32
    %14 = vector.broadcast %c0_i32_1 : i32 to vector<16x16xi32>
    %15 = arith.cmpi sgt, %0, %14 : vector<16x16xi32>
    %16 = arith.extui %15 : vector<16x16xi1> to vector<16x16xi32>
    %17 = arith.sitofp %16 : vector<16x16xi32> to vector<16x16xf32>
    %cst = arith.constant 0.000000e+00 : f32
    %18 = vector.broadcast %cst : f32 to vector<16x16xf32>
    %cst_2 = arith.constant 9.99999993E-9 : f32
    %c0_i32_3 = arith.constant 0 : i32
    %19 = arith.index_cast %c0_i32_3 : i32 to index
    %c0 = arith.constant 0 : index
    %c0_4 = arith.constant 0 : index
    %c0_5 = arith.constant 0 : index
    %20 = vector.load %arg2[%19, %c0, %c0_4, %c0_5] : memref<1x3x16x16xf32, #tpu.memory_space<vmem>>, vector<1x3x16x16xf32>
    %21 = vector.shape_cast %20 : vector<1x3x16x16xf32> to vector<3x16x16xf32>
    %22 = arith.index_cast %c0_i32_3 : i32 to index
    %c0_6 = arith.constant 0 : index
    %c0_7 = arith.constant 0 : index
    %c0_8 = arith.constant 0 : index
    %23 = vector.load %arg3[%22, %c0_6, %c0_7, %c0_8] : memref<1x3x16x16xf32, #tpu.memory_space<vmem>>, vector<1x3x16x16xf32>
    %24 = vector.shape_cast %23 : vector<1x3x16x16xf32> to vector<3x16x16xf32>
    %cst_9 = arith.constant dense<0.000000e+00> : vector<16x16xf32>
    %25 = vector.multi_reduction <add>, %21, %cst_9 [0] : vector<3x16x16xf32> to vector<16x16xf32>
    %26 = vector.extract_strided_slice %25 {offsets = [0, 1], sizes = [16, 15], strides = [1, 1]} : vector<16x16xf32> to vector<16x15xf32>
    %27 = vector.extract_strided_slice %25 {offsets = [0, 0], sizes = [16, 1], strides = [1, 1]} : vector<16x16xf32> to vector<16x1xf32>
    %28 = tpu.concatenate %26, %27 in 1 : vector<16x15xf32>, vector<16x1xf32> -> vector<16x16xf32>
    %29 = arith.mulf %28, %5 : vector<16x16xf32>
    %30 = vector.extract_strided_slice %25 {offsets = [0, 15], sizes = [16, 1], strides = [1, 1]} : vector<16x16xf32> to vector<16x1xf32>
    %31 = vector.extract_strided_slice %25 {offsets = [0, 0], sizes = [16, 15], strides = [1, 1]} : vector<16x16xf32> to vector<16x15xf32>
    %32 = tpu.concatenate %30, %31 in 1 : vector<16x1xf32>, vector<16x15xf32> -> vector<16x16xf32>
    %33 = arith.mulf %32, %9 : vector<16x16xf32>
    %34 = arith.subf %29, %33 : vector<16x16xf32>
    %35 = vector.extract_strided_slice %25 {offsets = [1, 0], sizes = [15, 16], strides = [1, 1]} : vector<16x16xf32> to vector<15x16xf32>
    %36 = vector.extract_strided_slice %25 {offsets = [0, 0], sizes = [1, 16], strides = [1, 1]} : vector<16x16xf32> to vector<1x16xf32>
    %37 = tpu.concatenate %35, %36 in 0 : vector<15x16xf32>, vector<1x16xf32> -> vector<16x16xf32>
    %38 = arith.mulf %37, %13 : vector<16x16xf32>
    %39 = vector.extract_strided_slice %25 {offsets = [15, 0], sizes = [1, 16], strides = [1, 1]} : vector<16x16xf32> to vector<1x16xf32>
    %40 = vector.extract_strided_slice %25 {offsets = [0, 0], sizes = [15, 16], strides = [1, 1]} : vector<16x16xf32> to vector<15x16xf32>
    %41 = tpu.concatenate %39, %40 in 0 : vector<1x16xf32>, vector<15x16xf32> -> vector<16x16xf32>
    %42 = arith.mulf %41, %17 : vector<16x16xf32>
    %43 = arith.subf %38, %42 : vector<16x16xf32>
    %44 = arith.mulf %34, %34 : vector<16x16xf32>
    %45 = arith.mulf %43, %43 : vector<16x16xf32>
    %46 = arith.addf %44, %45 : vector<16x16xf32>
    %47 = vector.broadcast %cst_2 : f32 to vector<16x16xf32>
    %48 = arith.addf %46, %47 : vector<16x16xf32>
    %49 = math.sqrt %48 : vector<16x16xf32>
    %cst_10 = arith.constant dense<0.000000e+00> : vector<16x16xf32>
    %50 = vector.multi_reduction <add>, %24, %cst_10 [0] : vector<3x16x16xf32> to vector<16x16xf32>
    %51 = vector.extract_strided_slice %50 {offsets = [0, 1], sizes = [16, 15], strides = [1, 1]} : vector<16x16xf32> to vector<16x15xf32>
    %52 = vector.extract_strided_slice %50 {offsets = [0, 0], sizes = [16, 1], strides = [1, 1]} : vector<16x16xf32> to vector<16x1xf32>
    %53 = tpu.concatenate %51, %52 in 1 : vector<16x15xf32>, vector<16x1xf32> -> vector<16x16xf32>
    %54 = arith.mulf %53, %5 : vector<16x16xf32>
    %55 = vector.extract_strided_slice %50 {offsets = [0, 15], sizes = [16, 1], strides = [1, 1]} : vector<16x16xf32> to vector<16x1xf32>
    %56 = vector.extract_strided_slice %50 {offsets = [0, 0], sizes = [16, 15], strides = [1, 1]} : vector<16x16xf32> to vector<16x15xf32>
    %57 = tpu.concatenate %55, %56 in 1 : vector<16x1xf32>, vector<16x15xf32> -> vector<16x16xf32>
    %58 = arith.mulf %57, %9 : vector<16x16xf32>
    %59 = arith.subf %54, %58 : vector<16x16xf32>
    %60 = vector.extract_strided_slice %50 {offsets = [1, 0], sizes = [15, 16], strides = [1, 1]} : vector<16x16xf32> to vector<15x16xf32>
    %61 = vector.extract_strided_slice %50 {offsets = [0, 0], sizes = [1, 16], strides = [1, 1]} : vector<16x16xf32> to vector<1x16xf32>
    %62 = tpu.concatenate %60, %61 in 0 : vector<15x16xf32>, vector<1x16xf32> -> vector<16x16xf32>
    %63 = arith.mulf %62, %13 : vector<16x16xf32>
    %64 = vector.extract_strided_slice %50 {offsets = [15, 0], sizes = [1, 16], strides = [1, 1]} : vector<16x16xf32> to vector<1x16xf32>
    %65 = vector.extract_strided_slice %50 {offsets = [0, 0], sizes = [15, 16], strides = [1, 1]} : vector<16x16xf32> to vector<15x16xf32>
    %66 = tpu.concatenate %64, %65 in 0 : vector<1x16xf32>, vector<15x16xf32> -> vector<16x16xf32>
    %67 = arith.mulf %66, %17 : vector<16x16xf32>
    %68 = arith.subf %63, %67 : vector<16x16xf32>
    %69 = arith.mulf %59, %59 : vector<16x16xf32>
    %70 = arith.mulf %68, %68 : vector<16x16xf32>
    %71 = arith.addf %69, %70 : vector<16x16xf32>
    %72 = vector.broadcast %cst_2 : f32 to vector<16x16xf32>
    %73 = arith.addf %71, %72 : vector<16x16xf32>
    %74 = math.sqrt %73 : vector<16x16xf32>
    %75 = arith.subf %49, %74 : vector<16x16xf32>
    %76 = math.absf %75 : vector<16x16xf32>
    %77 = arith.addf %18, %76 : vector<16x16xf32>
    %c1_i32 = arith.constant 1 : i32
    %cst_11 = arith.constant dense<0.000000e+00> : vector<16xf32>
    %78 = vector.multi_reduction <add>, %77, %cst_11 [0] : vector<16x16xf32> to vector<16xf32>
    %79 = vector.shape_cast %78 : vector<16xf32> to vector<1x16xf32>
    %80 = vector.shape_cast %79 : vector<1x16xf32> to vector<1x1x1x16xf32>
    %c0_12 = arith.constant 0 : index
    %c0_13 = arith.constant 0 : index
    %c0_14 = arith.constant 0 : index
    %c0_15 = arith.constant 0 : index
    %81 = vector.load %arg4[%c0_12, %c0_13, %c0_14, %c0_15] : memref<1x1x1x16xf32, #tpu.memory_space<vmem>>, vector<1x1x1x16xf32>
    tpu.vector_store %arg4[%c0_12, %c0_13, %c0_14, %c0_15], %80 {strides = array<i32>} : memref<1x1x1x16xf32, #tpu.memory_space<vmem>>, vector<1x1x1x16xf32>,
    return
  }
  func.func @transform_0(%arg0: i32, %arg1: i32) -> (i32, i32, i32, i32) {
    %c0_i32 = arith.constant 0 : i32
    %c0_i32_0 = arith.constant 0 : i32
    %c0_i32_1 = arith.constant 0 : i32
    return %arg0, %arg1, %c0_i32, %c0_i32_0 : i32, i32, i32, i32
  }
  func.func @transform_1(%arg0: i32, %arg1: i32) -> (i32, i32, i32, i32) {
    %c0_i32 = arith.constant 0 : i32
    %c0_i32_0 = arith.constant 0 : i32
    %c0_i32_1 = arith.constant 0 : i32
    return %arg0, %arg1, %c0_i32, %c0_i32_0 : i32, i32, i32, i32
  }
  func.func @transform_2(%arg0: i32, %arg1: i32) -> (i32, i32, i32, i32) {
    %c0_i32 = arith.constant 0 : i32
    %c0_i32_0 = arith.constant 0 : i32
    %c0_i32_1 = arith.constant 0 : i32
    return %arg0, %arg1, %c0_i32, %c0_i32_0 : i32, i32, i32, i32
  }
}

</mosaic_0001>

<bundles_post_ra>
// kernel: tpu_custom_call.1
= control target key start
LH: loop header
LB: loop body
LE: loop exit
PB: predicated region body
PF: predicated region fallthrough
CT: control target
= control target key end

     0   :  { %s1209_s0 = inlined_call_operand.hbm [shape: f32[2,9,16,16], index: 0, kind: input, shape index: {}]   ;;  %s1210_s1 = inlined_call_operand.hbm [shape: f32[2,9,16,16], index: 1, kind: input, shape index: {}]   ;;  %s1211_s2 = inlined_call_operand.hbm [shape: f32[2,3,1,16], index: 2, kind: output, shape index: {}]  }
   0x1   :  { %1216 = sst [smem:[#allocation12_spill]] %s1209_s0 }
   0x2   :  { %7 = vsyncpa [#allocation3], 0 }
   0x3   :  { %9 = vsyncpa [#allocation3 + $0x1], 0 }
   0x4   :  { %10 = vsyncpa [#allocation6], 0 }
   0x5   :  { %12 = vsyncpa [#allocation6 + $0x1], 0 }
   0x6   :  { %13 = vsyncpa [#allocation4], 0 }
   0x7   :  { %15 = vsyncpa [#allocation4 + $0x1], 0  ;;  %s894_s9 = smov 0   ;;  %s896_s10 = smov 0  }
   0x8   :  { %s898_s11 = smov 0   ;;  %s900_s12 = smov 0  }
   0x9   :  { %s902_s13 = smov 0   ;;  %s904_s14 = smov 0  }
   0xa   :  { %s906_s15 = smov 0   ;;  %s908_s16 = smov 0  }
   0xb LB: > { %s583_s17 = sadd.s32 4294967295, %s867_s16   ;;  %s584_s18 = sadd.s32 4294967294, %s867_s16   ;;  %s867_s16 = sphi %s908_s16, %s21_s16   ;;  %s863_s15 = sphi %s906_s15, %s1236_s15   ;;  %s859_s14 = sphi %s904_s14, %s1235_s14   ;;  %s855_s13 = sphi %s902_s13, %s1234_s13   ;;  %s851_s12 = sphi %s900_s12, %s1233_s12   ;;  %s847_s11 = sphi %s898_s11, %s1232_s11   ;;  %s843_s10 = sphi %s896_s10, %s1231_s10   ;;  %s839_s9 = sphi %s894_s9, %s1230_s9  }
   0xc   : > { %s30_s19 = sadd.s32 1, %s859_s14  ;;  %s33_s20 = sadd.s32 1, %s863_s15 }
   0xd   : > { %p31_p0 = scmp.ge.s32.totalorder %s30_s19, 3  ;;  %s42_s21 = sadd.s32 1, %s847_s11 }
   0xe   : > { %p49_p1 = scmp.ne.s32.totalorder %s847_s11, %s843_s10  ;;  %p50_p2 = scmp.eq.s32.totalorder %s867_s16, 0 }
   0xf   : > { %s1238_s19 = smov (%p31_p0, %s30_s19), 0  ;;  %s1240_s20 = smov (!%p31_p0, %s33_s20), %s863_s15 }
  0x10   : > { %s38_s22 = ssub.s32 %s859_s14, %s1238_s19  ;;  %p947_p3 = por %p50_p2, %p49_p1 }
  0x11   : > { %p35_p4 = scmp.ge.s32.totalorder %s1240_s20, 2  ;;  %p55_p5 = scmp.ne.s32.totalorder %s843_s10, %s839_s9 }
  0x12   : > { %p56_p6 = scmp.eq.s32.totalorder %s583_s17, 0  ;;  %p109_p7 = scmp.eq.s32.totalorder %s583_s17, 5 }
  0x13   : > { %s1242_s20 = smov (%p35_p4, %s1240_s20), 0  ;;  %p115_p10 = scmp.eq.s32.totalorder %s584_s18, 5 }
  0x14   : > { %1218 = sst [smem:[#allocation11_spill]] %s1242_s20  ;;  %p955_p8 = por %p56_p6, %p55_p5 }
  0x15   : > { %p959_p9 = por %p109_p7, %p49_p1  ;;  %s37_s26 = ssub.s32 %s863_s15, %s1242_s20 }
  0x16   : > { %s1219_s24 = scalar_select %p955_p8, 1, 0 }
  0x17   : > { %s1220_s25 = scalar_select %p959_p9, 1, 0 }
  0x18   : > { %s39_s27 = sor.u32 %s38_s22, %s37_s26  ;;  %p965_p12 = por %p115_p10, %p55_p5 }
  0x19   : > { %p40_p11 = scmp.eq.s32.totalorder %s39_s27, 0  ;;  %p624_p13 = scmp.lt.s32.totalorder %s867_s16, 6 }
  0x1a   : > { %s1221_s28 = scalar_select %p965_p12, 1, 0 }
  0x1b   : > { %s971_s29 = sand.u32 1, %s847_s11   ;;  %s599_s4 = smul.u32 6, %s859_s14 }
  0x1c   : > { %s974_s30 = scalar_select %p40_p11, %s847_s11, %s42_s21  }
  0x1d   : > { %s1212_s3 = smul.u32 48, %s971_s29  ;;  %p980_p0 = pnand %p624_p13, %p947_p3 }
  0x1e   : > { %s602_s6 = smul.u32 18, %s863_s15  ;;  %s1223_s0 = sld [smem:[#allocation12_spill]] }
  0x1f   : > { %s139_s7 = scalar_lea.vmem [#allocation2], %s1212_s3  ;;  %s136_s26 = scalar_lea.sflag [#allocation3], %s971_s29 }
  0x20   : > { %s149_s8 = sshll.u32 %s139_s7, 4  ;;  %s987_s17 = sadd.s32 %s602_s6, %s599_s4  ;;  %s989_s8 = int_to_ptr.vmem [resolvable:$true] %s149_s8 }
  0x21   : > { %s588_s18 = sshll.u32 %s987_s17, 7  ;;  %p707_p2 = pneg %p980_p0 }
  0x24   : > { %s997_s23 = scalar_lea.hbm %s1223_s0, %s588_s18  ;;  %s710_s7 = scalar_lea.hbm %s1223_s0, 4608 }
  0x25   : > { %s705_s27 = scalar_lea.hbm %s997_s23, 768  ;;  %p711_p5 = scmp.lt.u32.totalorder %s997_s23, %s1223_s0 }
  0x26   : > { %p706_p1 = scmp.ne.s32.totalorder %s997_s23, %s705_s27  ;;  %p712_p6 = scmp.lt.u32.totalorder %s710_s7, %s705_s27 }
  0x27   : > { %p714_p10 = scmp.lt.u32.totalorder %s705_s27, %s997_s23 }
  0x28   : > { %p708_p3 = pnand %p707_p2, %p706_p1  ;;  %p713_p7 = por %p712_p6, %p711_p5 }
  0x2a   : > { %p709_p4 = pneg %p708_p3  ;;  %p715_p11 = por %p714_p10, %p713_p7 }
  0x2c   : > { %p716_p13 = pnand %p715_p11, %p709_p4 }
  0x2e   : > { %719 = shalt.err (!%p716_p13)
}
  0x2f   : > { %s720_s3 = scalar_lea.vmem %s989_s8, 768  ;;  %s869_s4 = smov [#allocation2]  }
  0x30   : > { %p721_p1 = scmp.ne.s32.totalorder %s989_s8, %s720_s3  ;;  %s725_s6 = sshll.u32 %s869_s4, 4  ;;  %s726_s6 = int_to_ptr.vmem [resolvable:$false] %s725_s6 }
  0x31   : > { %s727_s21 = scalar_lea.vmem %s726_s6, 1536  ;;  %p728_p9 = scmp.lt.s32.totalorder %s989_s8, %s726_s6 }
  0x32   : > { %p723_p3 = pnand %p721_p1, %p707_p2  ;;  %p729_p5 = scmp.lt.s32.totalorder %s727_s21, %s720_s3 }
  0x34   : > { %p724_p12 = pneg %p723_p3  ;;  %p730_p6 = por %p729_p5, %p728_p9 }
  0x36   : > { %p731_p7 = pnand %p730_p6, %p724_p12 }
  0x38   : > { %734 = shalt.err (!%p731_p7)
}
  0x39   : > { %s870_s27 = smov 128   ;;  %s871_s7 = smov 8  }
  0x3a   : > { %616 = dma.hbm_to_vmem [thread:$0]  (!%p980_p0), %s997_s23, 768, %s989_s8, %s136_s26, %s870_s27, %s870_s27, %s871_s7  }
  0x3b   : > { %p591_p9 = scmp.ge.s32.totalorder %s867_s16, 1  ;;  %p181_p12 = scmp.lt.s32.totalorder %s867_s16, 7 }
  0x3c   : > { %s1041_s6 = scalar_lea.hbm %s1210_s1, %s588_s18  ;;  %s1225_s21 = smul.u32 48, %s971_s29 }
  0x3d   : > { %p1032_p4 = pnand %p591_p9, %p181_p12  ;;  %s160_s8 = scalar_lea.sflag [#allocation6], %s971_s29 }
  0x3e   : > { %s163_s0 = scalar_lea.vmem [#allocation5], %s1225_s21  ;;  %s735_s23 = scalar_lea.hbm %s1041_s6, 768 }
  0x3f   : > { %s173_s20 = sshll.u32 %s163_s0, 4  ;;  %p736_p10 = scmp.ne.s32.totalorder %s1041_s6, %s735_s23  ;;  %s1045_s20 = int_to_ptr.vmem [resolvable:$true] %s173_s20 }
  0x40   : > { %s740_s18 = scalar_lea.hbm %s1210_s1, 4608  ;;  %p741_p1 = scmp.lt.u32.totalorder %s1041_s6, %s1210_s1 }
  0x41   : > { %p738_p11 = pnand %p736_p10, %p707_p2  ;;  %p742_p3 = scmp.lt.u32.totalorder %s740_s18, %s735_s23 }
  0x42   : > { %p744_p6 = scmp.lt.u32.totalorder %s735_s23, %s1041_s6 }
  0x43   : > { %p739_p13 = pneg %p738_p11  ;;  %p743_p5 = por %p742_p3, %p741_p1 }
  0x45   : > { %p745_p7 = por %p744_p6, %p743_p5 }
  0x47   : > { %p746_p9 = pnand %p745_p7, %p739_p13 }
  0x49   : > { %749 = shalt.err (!%p746_p9)
}
  0x4a   : > { %s750_s0 = scalar_lea.vmem %s1045_s20, 768  ;;  %s872_s21 = smov [#allocation5]  }
  0x4b   : > { %p751_p12 = scmp.ne.s32.totalorder %s1045_s20, %s750_s0  ;;  %s755_s17 = sshll.u32 %s872_s21, 4  ;;  %s756_s17 = int_to_ptr.vmem [resolvable:$false] %s755_s17 }
  0x4c   : > { %s757_s26 = scalar_lea.vmem %s756_s17, 1536  ;;  %p758_p8 = scmp.lt.s32.totalorder %s1045_s20, %s756_s17 }
  0x4d   : > { %p753_p10 = pnand %p751_p12, %p707_p2  ;;  %p759_p1 = scmp.lt.s32.totalorder %s757_s26, %s750_s0 }
  0x4f   : > { %p754_p11 = pneg %p753_p10  ;;  %p760_p3 = por %p759_p1, %p758_p8 }
  0x51   : > { %p761_p5 = pnand %p760_p3, %p754_p11 }
  0x53   : > { %764 = shalt.err (!%p761_p5)
}
  0x54   : > { %619 = dma.hbm_to_vmem [thread:$0]  (!%p980_p0), %s1041_s6, 768, %s1045_s20, %s160_s8, %s870_s27, %s870_s27, %s871_s7  }
  0x55   : > { %185 = sbr.rel (%p1032_p4) target bundleno = 304 (0x130), region = 28  ;;  %s1079_s23 = sand.u32 (!%p1032_p4), 1, %s843_s10  }
  0x56   : > { %s605_s18 = smul.u32 (!%p1032_p4), 48, %s1079_s23  ;;  %s188_s22 = scalar_lea.sflag (!%p1032_p4), [#allocation3], %s1079_s23 }
  0x57   : > { %p1226_p8 = scmp.ne.s32.totalorder (!%p1032_p4), %s1219_s24, 0 }
  0x58   : > { %s191_s5 = scalar_lea.vmem (!%p1032_p4), [#allocation2], %s605_s18 }
  0x5c   : > { %826 = dma.done.wait (%p1226_p8), %s188_s22, 768  }
  0x5d   : > { %828 = vsyncadd (%p1226_p8), %s188_s22, 4294966528  ;;  %s197_s20 = scalar_lea.sflag [#allocation6], %s1079_s23  ;;  %s1088_s29 = scalar_lea.vmem [#allocation5], %s605_s18 }
  0x5e   : > { %830 = dma.done.wait (%p1226_p8), %s197_s20, 768  }
  0x5f   : > { %832 = vsyncadd (%p1226_p8), %s197_s20, 4294966528  ;;  %v227_v0 = vlaneseq  ;;  %vm262_vm0 = vcmask 130048   ;;  %v250_v2 = vld [vmem:[%s191_s5] sm:$0xff]  ;;  %v252_v3 = vld [vmem:[%s191_s5 + $0x10] sm:$0xff]  ;;  %s873_s24 = smov 15   ;;  %s874_s27 = smov 127  }
  0x60   : > { %v254_v4 = vld [vmem:[%s191_s5 + $0x20] sm:$0xff]  ;;  %v263_v6 = vsel %vm262_vm0, %v250_v2, 0.0  ;;  %v264_v7 = vsel %vm262_vm0, %v252_v3, 0.0  ;;  %v251_v9 = vld [vmem:[%s191_s5 + $0x8] sm:$0xff]  ;;  %v253_v10 = vld [vmem:[%s191_s5 + $0x18] sm:$0xff]  ;;  %vm311_vm2 = vcmask 1046528  }
  0x61   : > { %v228_v1 = vshrl.u32 %v227_v0, 7  ;;  %v266_v8 = vsel %vm262_vm0, %v254_v4, 0.0  ;;  %v255_v11 = vld [vmem:[%s191_s5 + $0x28] sm:$0xff]  ;;  %v265_v12 = vadd.f32 %v264_v7, %v263_v6  ;;  %v268_v13 = vsel %vm262_vm0, %v251_v9, 0.0  ;;  %v259_v20 = vld [vmem:[%s1088_s29 + $0x18] sm:$0xff]  ;;  %v256_v23 = vld [vmem:[%s1088_s29] sm:$0xff] }
  0x62   : > { %v269_v14 = vsel %vm262_vm0, %v253_v10, 0.0  ;;  %v271_v15 = vsel %vm262_vm0, %v255_v11, 0.0  ;;  %v257_v19 = vld [vmem:[%s1088_s29 + $0x8] sm:$0xff]  ;;  %vm323_vm3 = vcmask 1040384   ;;  %v258_v24 = vld [vmem:[%s1088_s29 + $0x10] sm:$0xff]  ;;  %v875_v25 = vmov 0.0  }
  0x63   : > { %v229_v5 = vadd.s32 8, %v228_v1  ;;  %v270_v16 = vadd.f32 %v269_v14, %v268_v13  ;;  %v267_v17 = vadd.f32 %v266_v8, %v265_v12  ;;  %vm244_vm4 = vcmp.gt.s32.totalorder %v228_v1, 0  ;;  %v261_v39 = vld [vmem:[%s1088_s29 + $0x28] sm:$0xff]  ;;  %v260_v40 = vld [vmem:[%s1088_s29 + $0x20] sm:$0xff]  ;;  %s876_s7 = smov 113   ;;  %s877_s3 = smov 1  }
  0x64   : > { %v360_v29 = vsel %vm262_vm0, %v257_v19, 0.0  ;;  %v595_v30 = vsel %vm244_vm4, 1.0, %v875_v25  ;;  %v361_v31 = vsel %vm262_vm0, %v259_v20, 0.0  ;;  %v355_v35 = vsel %vm262_vm0, %v256_v23, 0.0  ;;  %s606_s6 = smul.u32 3, %s855_s13  ;;  %s224_s0 = scalar_lea.vmem [#allocation7], %s1079_s23 }
  0x65   : > { %v272_v18 = vadd.f32 %v271_v15, %v270_v16  ;;  %281 = vrot.lane.b32.xlu1 %v267_v17, %s873_s24  ;;  %275 = vrot.lane.b32.xlu0 %v267_v17, %s874_s27  ;;  %vm239_vm1 = vcmp.lt.s32.totalorder %v229_v5, 15  ;;  %v312_v27 = vrot.slane %v267_v17, 1  ;;  %v324_v28 = vrot.slane %v267_v17, 7  ;;  %s475_s21 = sshll.u32 %s224_s0, 4  ;;  %s461_s13 = scalar_lea.sflag [#allocation4], %s1079_s23  ;;  %s1157_s21 = int_to_ptr.vmem [resolvable:$true] %s475_s21 }
  0x66   : > { %v594_v26 = vsel %vm239_vm1, 1.0, %v875_v25  ;;  %v356_v36 = vsel %vm262_vm0, %v258_v24, 0.0  ;;  %v362_v43 = vadd.f32 %v361_v31, %v360_v29  ;;  %v363_v46 = vsel %vm262_vm0, %v261_v39, 0.0  ;;  %s471_s8 = sadd.s32 %s851_s12, %s606_s6  ;;  %s765_s12 = scalar_lea.vmem %s1157_s21, 16 }
  0x67   : > { %v313_v21 = vrot.slane %v272_v18, 1  ;;  %v321_v22 = vrot.slane %v272_v18, 7  ;;  %v357_v44 = vadd.f32 %v356_v36, %v355_v35  ;;  %v358_v47 = vsel %vm262_vm0, %v260_v40, 0.0  ;;  %s596_s4 = sshll.u32 %s471_s8, 4  ;;  %p766_p0 = scmp.ne.s32.totalorder %s1157_s21, %s765_s12 }
  0x68   : > { %v364_v48 = vadd.f32 %v363_v46, %v362_v43  ;;  %v231_v3 = vand.u32 127, %v227_v0  ;;  %vm304_vm6 = vcmask 7168   ;;  %vm287_vm8 = vcmask 121856   ;;  %s1155_s18 = scalar_lea.hbm %s1211_s2, %s596_s4  ;;  %p1227_p2 = scmp.ne.s32.totalorder %s1220_s25, 0 }
  0x69   : > { %283 = vrot.lane.b32.xlu1 %v272_v18, %s873_s24  ;;  %277 = vrot.lane.b32.xlu0 %v272_v18, %s874_s27  ;;  %v318_v32 = vsel %vm311_vm2, %v313_v21, %v312_v27  ;;  %v325_v33 = vsel %vm323_vm3, %v324_v28, %v321_v22  ;;  %v314_v34 = vsel %vm311_vm2, %v312_v27, %v313_v21  ;;  %s878_s22 = smov [#allocation7]  }
  0x6a   : > { %v320_v37 = vmul.f32 %v594_v26, %v318_v32  ;;  %v328_v38 = vsel %vm323_vm3, %v321_v22, %v324_v28  ;;  %v359_v49 = vadd.f32 %v358_v47, %v357_v44  ;;  %v402_v51 = vrot.slane %v364_v48, 1  ;;  %p767_p4 = pnand %p766_p0, %p1227_p2  ;;  %s769_s5 = sshll.u32 %s878_s22, 4  ;;  %s770_s5 = int_to_ptr.vmem [resolvable:$false] %s769_s5 }
  0x6b   : > { %v329_v41 = vmul.f32 %v595_v30, %v328_v38  ;;  %v410_v52 = vrot.slane %v364_v48, 7  ;;  %vm235_vm5 = vcmp.gt.s32.totalorder %v231_v3, 0  ;;  %vm232_vm7 = vcmp.lt.s32.totalorder %v231_v3, 15  ;;  %s771_s20 = scalar_lea.vmem %s770_s5, 32  ;;  %p772_p6 = scmp.lt.s32.totalorder %s1157_s21, %s770_s5 }
  0x6c   : > { %v1121_v42 = vsub.f32 %v320_v37, %v325_v33  ;;  %v401_v50 = vrot.slane %v359_v49, 1  ;;  %v412_v53 = vrot.slane %v359_v49, 7  ;;  %v593_v6 = vsel %vm235_vm5, 1.0, %v875_v25  ;;  %p768_p13 = pneg %p767_p4  ;;  %p773_p7 = scmp.lt.s32.totalorder %s771_s20, %s765_s12 }
  0x6d   : > { %294 = vrot.lane.b32.xlu1 %v272_v18, %s876_s7  ;;  %292 = vrot.lane.b32.xlu0 %v267_v17, %s876_s7  ;;  %v331_v45 = vsub.f32 %v314_v34, %v329_v41  ;;  %v592_v12 = vsel %vm232_vm7, 1.0, %v875_v25 }
  0x6e   : > { %v407_v54 = vsel %vm311_vm2, %v402_v51, %v401_v50  ;;  %v416_v55 = vsel %vm323_vm3, %v410_v52, %v412_v53  ;;  %v413_v58 = vsel %vm323_vm3, %v412_v53, %v410_v52  ;;  %v403_v59 = vsel %vm311_vm2, %v401_v50, %v402_v51  ;;  %p774_p9 = por %p773_p7, %p772_p6 }
  0x6f   : > { %v409_v56 = vmul.f32 %v594_v26, %v407_v54  ;;  %v417_v57 = vmul.f32 %v595_v30, %v416_v55  ;;  %v336_v24 = vmul.f32 %v1121_v42, %v1121_v42  ;;  %v335_v27 = vmul.f32 %v331_v45, %v331_v45 }
  0x70   : > { %vm458_vm2 = vcmask 122880   ;;  %p775_p12 = pnand %p774_p9, %p768_p13 }
  0x71   : > { %300 = vrot.lane.b32.xlu1 %v272_v18, %s877_s3  ;;  %298 = vrot.lane.b32.xlu0 %v267_v17, %s877_s3  ;;  %v420_v60 = vsub.f32 %v409_v56, %v413_v58  ;;  %v419_v61 = vsub.f32 %v403_v59, %v417_v57 }
  0x73   : > { %v424_v43 = vmul.f32 %v420_v60, %v420_v60  ;;  %v423_v45 = vmul.f32 %v419_v61, %v419_v61 }
  0x75   : > { %369 = vrot.lane.b32.xlu1 %v364_v48, %s874_s27  ;;  %367 = vrot.lane.b32.xlu0 %v359_v49, %s874_s27 }
  0x79   : > { %375 = vrot.lane.b32.xlu1 %v364_v48, %s873_s24  ;;  %373 = vrot.lane.b32.xlu0 %v359_v49, %s873_s24 }
  0x7d   : > { %385 = vrot.lane.b32.xlu1 %v364_v48, %s876_s7  ;;  %383 = vrot.lane.b32.xlu0 %v359_v49, %s876_s7 }
  0x81   : > { %391 = vrot.lane.b32.xlu1 %v364_v48, %s877_s3  ;;  %389 = vrot.lane.b32.xlu0 %v359_v49, %s877_s3 }
  0xd7   : > { %v282_v62 = vpop.permute.xlu1 %281  ;;  %v276_v63 = vpop.permute.xlu0 %275 }
  0xd8   : > { %v288_v0 = vsel %vm287_vm8, %v276_v63, %v282_v62 }
  0xd9   : > { %v290_v18 = vmul.f32 %v592_v12, %v288_v0 }
  0xdb   : > { %v284_v1 = vpop.permute.xlu1 %283  ;;  %v278_v2 = vpop.permute.xlu0 %277 }
  0xdc   : > { %v289_v7 = vsel %vm287_vm8, %v278_v2, %v284_v1 }
  0xdd   : > { %v291_v14 = vmul.f32 %v592_v12, %v289_v7 }
  0xdf   : > { %v295_v4 = vpop.permute.xlu1 %294  ;;  %v293_v5 = vpop.permute.xlu0 %292 }
  0xe3   : > { %v301_v8 = vpop.permute.xlu1 %300  ;;  %v299_v9 = vpop.permute.xlu0 %298 }
  0xe4   : > { %v306_v10 = vsel %vm304_vm6, %v295_v4, %v301_v8  ;;  %v305_v11 = vsel %vm304_vm6, %v293_v5, %v299_v9 }
  0xe5   : > { %v308_v13 = vmul.f32 %v593_v6, %v306_v10  ;;  %v307_v15 = vmul.f32 %v593_v6, %v305_v11 }
  0xe7   : > { %v370_v16 = vpop.permute.xlu1 %369  ;;  %v368_v17 = vpop.permute.xlu0 %367  ;;  %v310_v19 = vsub.f32 %v291_v14, %v308_v13  ;;  %v309_v20 = vsub.f32 %v290_v18, %v307_v15 }
  0xe9   : > { %v334_v23 = vmul.f32 %v310_v19, %v310_v19  ;;  %v333_v26 = vmul.f32 %v309_v20, %v309_v20 }
  0xeb   : > { %v376_v21 = vpop.permute.xlu1 %375  ;;  %v374_v22 = vpop.permute.xlu0 %373  ;;  %v338_v29 = vadd.f32 %v336_v24, %v334_v23  ;;  %v337_v30 = vadd.f32 %v335_v27, %v333_v26 }
  0xec   : > { %v380_v31 = vsel %vm287_vm8, %v370_v16, %v376_v21  ;;  %v379_v32 = vsel %vm287_vm8, %v368_v17, %v374_v22 }
  0xed   : > { %v340_v35 = vadd.f32 1e-08, %v338_v29  ;;  %v382_v38 = vmul.f32 %v592_v12, %v380_v31  ;;  %v381_v39 = vmul.f32 %v592_v12, %v379_v32  ;;  %v339_v42 = vadd.f32 1e-08, %v337_v30 }
  0xef   : > { %v386_v28 = vpop.permute.xlu1 %385  ;;  %v384_v25 = vpop.permute.xlu0 %383  ;;  %697 = vrsqrt.f32 %v340_v35  ;;  %vm350_vm9 = vcmp.eq.f32.partialorder %v340_v35, inf  ;;  %vm352_vm10 = vcmp.eq.f32.partialorder %v340_v35, 0.0  ;;  %v353_v58 = vand.u32 2147483648, %v340_v35 }
  0xf0   : > { %699 = vrsqrt.f32 %v339_v42  ;;  %vm343_vm11 = vcmp.eq.f32.partialorder %v339_v42, inf  ;;  %vm345_vm12 = vcmp.eq.f32.partialorder %v339_v42, 0.0  ;;  %v346_v61 = vand.u32 2147483648, %v339_v42 }
  0xf3   : > { %v392_v33 = vpop.permute.xlu1 %391  ;;  %v390_v34 = vpop.permute.xlu0 %389 }
  0xf4   : > { %v396_v36 = vsel %vm304_vm6, %v386_v28, %v392_v33  ;;  %v395_v37 = vsel %vm304_vm6, %v384_v25, %v390_v34 }
  0xf5   : > { %v398_v40 = vmul.f32 %v593_v6, %v396_v36  ;;  %v397_v41 = vmul.f32 %v593_v6, %v395_v37 }
  0xf7   : > { %v400_v44 = vsub.f32 %v382_v38, %v398_v40  ;;  %v399_v46 = vsub.f32 %v381_v39, %v397_v41 }
  0xf9   : > { %v422_v47 = vmul.f32 %v400_v44, %v400_v44  ;;  %v421_v48 = vmul.f32 %v399_v46, %v399_v46  ;;  %v698_v53 = vpop.eup %697 }
  0xfa   : > { %v700_v54 = vpop.eup %699  ;;  %v349_v55 = vmul.f32 %v698_v53, %v340_v35 }
  0xfb   : > { %v426_v49 = vadd.f32 %v424_v43, %v422_v47  ;;  %v425_v50 = vadd.f32 %v423_v45, %v421_v48  ;;  %v342_v56 = vmul.f32 %v700_v54, %v339_v42 }
  0xfc   : > { %v351_v60 = vsel %vm350_vm9, %v340_v35, %v349_v55 }
  0xfd   : > { %v428_v51 = vadd.f32 1e-08, %v426_v49  ;;  %v427_v52 = vadd.f32 1e-08, %v425_v50  ;;  %v344_v63 = vsel %vm343_vm11, %v339_v42, %v342_v56  ;;  %v354_v6 = vsel %vm352_vm10, %v353_v58, %v351_v60 }
  0xfe   : > { %v347_v8 = vsel %vm345_vm12, %v346_v61, %v344_v63 }
  0xff   : > { %701 = vrsqrt.f32 %v428_v51  ;;  %vm438_vm13 = vcmp.eq.f32.partialorder %v428_v51, inf  ;;  %v441_v1 = vand.u32 2147483648, %v428_v51  ;;  %vm440_vm14 = vcmp.eq.f32.partialorder %v428_v51, 0.0 }
 0x100   : > { %703 = vrsqrt.f32 %v427_v52  ;;  %vm431_vm15 = vcmp.eq.f32.partialorder %v427_v52, inf  ;;  %v434_v4 = vand.u32 2147483648, %v427_v52  ;;  %vm433_vm1 = vcmp.eq.f32.partialorder %v427_v52, 0.0 }
 0x109   : > { %v702_v57 = vpop.eup %701 }
 0x10a   : > { %v704_v59 = vpop.eup %703  ;;  %v437_v62 = vmul.f32 %v702_v57, %v428_v51 }
 0x10b   : > { %v430_v2 = vmul.f32 %v704_v59, %v427_v52 }
 0x10c   : > { %v439_v3 = vsel %vm438_vm13, %v428_v51, %v437_v62 }
 0x10d   : > { %v432_v5 = vsel %vm431_vm15, %v427_v52, %v430_v2  ;;  %v442_v7 = vsel %vm440_vm14, %v441_v1, %v439_v3 }
 0x10e   : > { %v435_v9 = vsel %vm433_vm1, %v434_v4, %v432_v5  ;;  %v444_v10 = vsub.f32 %v354_v6, %v442_v7 }
 0x10f   : > { %v443_v11 = vsub.f32 %v347_v8, %v435_v9 }
 0x110   : > { %v446_v12 = vand.u32 2147483647, %v444_v10 }
 0x111   : > { %v445_v0 = vand.u32 2147483647, %v443_v11 }
 0x112   : > { %v450_v13 = vsel %vm262_vm0, %v446_v12, 0.0 }
 0x113   : > { %v449_v14 = vsel %vm262_vm0, %v445_v0, 0.0 }
 0x114   : > { %v451_v15 = vadd.f32 %v450_v13, %v449_v14 }
 0x116   : > { %v452_v16 = vrot.slane %v451_v15, 4 }
 0x118   : > { %v453_v17 = vadd.f32 %v452_v16, %v451_v15 }
 0x11a   : > { %v454_v18 = vrot.slane %v453_v17, 2 }
 0x11c   : > { %v455_v19 = vadd.f32 %v454_v18, %v453_v17 }
 0x11e   : > { %v456_v20 = vrot.slane %v455_v19, 1 }
 0x120   : > { %v457_v21 = vadd.f32 %v456_v20, %v455_v19 }
 0x122   : > { %459 = vst.msk [vmem:[%s224_s0] sm:$0x1] %vm458_vm2, %v457_v21 }
 0x123   : > { %778 = shalt.err (!%p775_p12)
}
 0x124   : > { %s779_s23 = scalar_lea.hbm %s1155_s18, 16  ;;  %s783_s27 = scalar_lea.hbm %s1211_s2, 96 }
 0x125   : > { %p780_p10 = scmp.ne.s32.totalorder %s1155_s18, %s779_s23  ;;  %p784_p3 = scmp.lt.u32.totalorder %s1155_s18, %s1211_s2 }
 0x126   : > { %p785_p5 = scmp.lt.u32.totalorder %s783_s27, %s779_s23  ;;  %p787_p0 = scmp.lt.u32.totalorder %s779_s23, %s1155_s18 }
 0x127   : > { %p781_p11 = pnand %p780_p10, %p1227_p2 }
 0x128   : > { %p786_p8 = por %p785_p5, %p784_p3 }
 0x129   : > { %p782_p1 = pneg %p781_p11 }
 0x12a   : > { %p788_p4 = por %p787_p0, %p786_p8 }
 0x12c   : > { %p789_p13 = pnand %p788_p4, %p782_p1 }
 0x12e   : > { %792 = shalt.err (!%p789_p13)
}
 0x12f   : > { %611 = dma.vmem_to_hbm [thread:$0]  (%p1227_p2), %s1157_s21, 16, %s1155_s18, %s461_s13  }
 0x130 PF: > { %p625_p6 = scmp.ge.s32.totalorder %s867_s16, 2  ;;  %s487_s6 = sand.u32 1, %s839_s9  }
 0x131   : > { %p1228_p7 = scmp.ne.s32.totalorder %s1221_s28, 0  ;;  %s488_s8 = scalar_lea.sflag [#allocation4], %s487_s6 }
 0x133   : > { %p621_p9 = pnand %p625_p6, %p1228_p7 }
 0x135   : > { %834 = dma.done.wait (!%p621_p9), %s488_s8, 16  }
 0x136   : > { %836 = vsyncadd (!%p621_p9), %s488_s8, 4294967280  ;;  %s21_s16 = sadd.s32 1, %s867_s16   ;;  %s1229_s25 = sld [smem:[#allocation11_spill]] }
 0x137   : > { %p18_p12 = scmp.ge.s32.totalorder %s21_s16, 8   ;;  %s1230_s9 = smov %s843_s10 }
 0x138   : > { %s1231_s10 = smov %s847_s11  ;;  %s1232_s11 = smov %s974_s30 }
 0x139   : > { %s1233_s12 = smov %s859_s14  ;;  %s1234_s13 = smov %s863_s15 }
 0x13a   : > { %s1235_s14 = smov %s1238_s19  ;;  %20 = sbr.rel (!%p18_p12) target bundleno = 11 (0xb), region = 86 }
 0x13c   : > { %s1236_s15 = smov %s1229_s25 }
 0x141   :  { %492 = vsyncpa [#allocation3], 1 }
 0x142   :  { %494 = vsyncpa [#allocation3 + $0x1], 1 }
 0x143   :  { %495 = vsyncpa [#allocation6], 1 }
 0x144   :  { %497 = vsyncpa [#allocation6 + $0x1], 1 }
 0x145   :  { %498 = vsyncpa [#allocation4], 1 }
 0x146   :  { %500 = vsyncpa [#allocation4 + $0x1], 1 }

</bundles_post_ra>
